<compile_context>
chip_gen: v5e
topology: v5e:2x2
jax: 0.10.0
libtpu: 0.0.40
codegen_flags: <defaults>
</compile_context>

<pallas_src>
import jax
import jax.numpy as jnp
from jax import lax
from jax.experimental import pallas as pl
from jax.experimental.pallas import tpu as pltpu

HIDDEN = 32            # packing layout requires HIDDEN <= 64
IN_FEAT = 196          # 14 * 14
N_CLASSES = 10
N_OUT = 2
LANES = 128

# Packed parameter slab layout (rows, all offsets 8-aligned):
W1_OFF = 0                         # rows [0, 392)   : W1_full (392, 128)
W2_OFF = W1_OFF + 2 * IN_FEAT      # rows [392, 520) : W2_full (128, 128)
WH_OFF = W2_OFF + LANES            # rows [520, 648) : WH_full (128, 128)
B_OFF = WH_OFF + LANES             # rows [648, 656) : bias block (8, 128)
P_ROWS = B_OFF + 8                 # 656

# Output-slab column layout:
AUX1_COLS = (0, N_CLASSES)                         # [0, 10)
AUX2_COLS = (N_CLASSES, 2 * N_CLASSES)             # [10, 20)
OUT_COLS = (2 * N_CLASSES, 2 * N_CLASSES + N_OUT)  # [20, 22)


def mlp_kernel(x_ref, p_ref, out_ref):
    """x_ref: (TB, 392), p_ref: (656, 128), out_ref: (TB, 128)."""
    x = x_ref[...]

    w1 = p_ref[W1_OFF:W1_OFF + 2 * IN_FEAT, :]   # (392, 128)
    w2 = p_ref[W2_OFF:W2_OFF + LANES, :]         # (128, 128)
    wh = p_ref[WH_OFF:WH_OFF + LANES, :]         # (128, 128)
    b1 = p_ref[B_OFF + 0:B_OFF + 1, :]           # (1, 128)
    b2 = p_ref[B_OFF + 1:B_OFF + 2, :]           # (1, 128)
    bh = p_ref[B_OFF + 2:B_OFF + 3, :]           # (1, 128)

    # Fused layer 1 + layer 2 (ReLU act_fun); zero-padded blocks keep the
    # unused lanes exactly zero through the ReLUs.
    h1 = jnp.maximum(
        jnp.dot(x, w1, preferred_element_type=jnp.float32) + b1, 0.0)
    h2 = jnp.maximum(
        jnp.dot(h1, w2, preferred_element_type=jnp.float32) + b2, 0.0)

    # Fused heads: cols 0:10 aux1 logits, 10:20 aux2 logits, 20:22 final out.
    logits = jnp.dot(h2, wh, preferred_element_type=jnp.float32) + bh  # (TB,128)

    lane = lax.broadcasted_iota(jnp.int32, logits.shape, 1)
    mask1 = (lane >= AUX1_COLS[0]) & (lane < AUX1_COLS[1])
    mask2 = (lane >= AUX2_COLS[0]) & (lane < AUX2_COLS[1])
    mask_out = (lane >= OUT_COLS[0]) & (lane < OUT_COLS[1])

    neg_big = jnp.float32(-1e30)
    pos_big = jnp.float32(1e30)

    # Two masked lane-maxes (XLU), then ONE full-width exp (EUP) with a
    # per-lane shift: softmax lanes get their group max, all other lanes get
    # +1e30 so the exp underflows to exactly 0.
    m1 = jnp.max(jnp.where(mask1, logits, neg_big), axis=-1, keepdims=True)
    m2 = jnp.max(jnp.where(mask2, logits, neg_big), axis=-1, keepdims=True)
    shift = jnp.where(mask1, m1, jnp.where(mask2, m2, pos_big))
    e = jnp.exp(logits - shift)                                   # (TB, 128)

    # Two masked sums, one per-lane denominator select, ONE divide.
    s1 = jnp.sum(jnp.where(mask1, e, 0.0), axis=-1, keepdims=True)
    s2 = jnp.sum(jnp.where(mask2, e, 0.0), axis=-1, keepdims=True)
    denom = jnp.where(mask1, s1, jnp.where(mask2, s2, 1.0))
    probs = e / denom            # exact div keeps 1e-5 tolerance; 0 off-mask

    out_part = jnp.where(mask_out, logits, 0.0)

    # Disjoint column supports -> single lane-dense store.
    out_ref[...] = probs + out_part


def pack_params(p, hidden=HIDDEN):
    """Pack all Linear weights/biases into one (656, 128) f32 slab."""
    H = hidden
    assert 2 * H <= LANES

    w1 = jnp.zeros((2 * IN_FEAT, LANES), jnp.float32)
    w1 = w1.at[0:IN_FEAT, 0:H].set(p["w1_1"])
    w1 = w1.at[IN_FEAT:2 * IN_FEAT, H:2 * H].set(p["w1_2"])

    w2 = jnp.zeros((LANES, LANES), jnp.float32)
    w2 = w2.at[0:H, 0:H].set(p["w2_1"])
    w2 = w2.at[H:2 * H, H:2 * H].set(p["w2_2"])

    wh = jnp.zeros((LANES, LANES), jnp.float32)
    wh = wh.at[0:H, AUX1_COLS[0]:AUX1_COLS[1]].set(p["wa1"])
    wh = wh.at[H:2 * H, AUX2_COLS[0]:AUX2_COLS[1]].set(p["wa2"])
    wh = wh.at[0:2 * H, OUT_COLS[0]:OUT_COLS[1]].set(p["w3"])

    bias = jnp.zeros((8, LANES), jnp.float32)
    bias = bias.at[0, 0:H].set(p["b1_1"].reshape(-1))
    bias = bias.at[0, H:2 * H].set(p["b1_2"].reshape(-1))
    bias = bias.at[1, 0:H].set(p["b2_1"].reshape(-1))
    bias = bias.at[1, H:2 * H].set(p["b2_2"].reshape(-1))
    bias = bias.at[2, AUX1_COLS[0]:AUX1_COLS[1]].set(p["ba1"].reshape(-1))
    bias = bias.at[2, AUX2_COLS[0]:AUX2_COLS[1]].set(p["ba2"].reshape(-1))
    bias = bias.at[2, OUT_COLS[0]:OUT_COLS[1]].set(p["b3"].reshape(-1))

    packed = jnp.concatenate([w1, w2, wh, bias], axis=0)
    assert packed.shape == (P_ROWS, LANES)
    return packed


def _pick_batch_tile(B):
    """Fixed tile with >=2 grid steps for large B; single block for small B."""
    if B <= 256:
        return B
    for cand in (2048, 1024, 512, 256):
        if B >= 2 * cand:
            return cand
    return 256


def _vmem_bytes_estimate(tb):
    """Generous per-core VMEM working-set estimate for one batch tile."""
    x_lanes = 512                           # 392 lane-pads to 512
    in_db = 2 * tb * x_lanes * 4            # double-buffered input tile
    out_db = 2 * tb * LANES * 4             # double-buffered output tile
    params = 2 * P_ROWS * LANES * 4         # packed weights (worst case 2 bufs)
    live = 12 * tb * LANES * 4              # f32 intermediates (h1,h2,logits,exp,...)
    return in_db + out_db + params + live + (2 << 20)


def _run_pallas(x_flat, packed_params, tb, grid, b_pad, single_buffer_params):
    if single_buffer_params:
        param_spec = pl.BlockSpec((P_ROWS, LANES), lambda i: (0, 0),
                                  pipeline_mode=pl.Buffered(buffer_count=1))
    else:
        param_spec = pl.BlockSpec((P_ROWS, LANES), lambda i: (0, 0))

    cp_kwargs = dict(dimension_semantics=("parallel",))
    if tb >= 1024:
        # v5e default scoped VMEM is 16 MiB; raise it (sized from the actual
        # working set, well under physical VMEM on all generations).
        est = _vmem_bytes_estimate(tb)
        cp_kwargs["vmem_limit_bytes"] = int(min(2 * est, 48 * 1024 * 1024))

    return pl.pallas_call(
        mlp_kernel,
        out_shape=jax.ShapeDtypeStruct((b_pad, LANES), jnp.float32),
        grid=grid,
        in_specs=[
            pl.BlockSpec((tb, 2 * IN_FEAT), lambda i: (i, 0)),
            param_spec,
        ],
        out_specs=pl.BlockSpec((tb, LANES), lambda i: (i, 0)),
        compiler_params=pltpu.CompilerParams(**cp_kwargs),
    )(x_flat, packed_params)


def mlp_nosharing_aux(x, packed_params):
    """x: (B, 2, 14, 14) f32. packed_params: (656, 128) f32 from pack_params."""
    B = x.shape[0]
    # NCHW row-major: reshape gives [ch0 196 values | ch1 196 values] per row.
    x_flat = x.reshape(B, 2 * IN_FEAT)

    # Fixed batch tile + cdiv grid (host-side zero pad for ragged B) so large
    # batches always present >=2 "parallel" grid steps (v7x megacore) and the
    # per-block VMEM footprint stays bounded.
    tb = _pick_batch_tile(B)
    grid = (pl.cdiv(B, tb),)
    b_pad = grid[0] * tb
    if b_pad != B:
        x_flat = jnp.pad(x_flat, ((0, b_pad - B), (0, 0)))

    try:
        out_slab = _run_pallas(x_flat, packed_params, tb, grid, b_pad, True)
    except Exception:
        # Fallback if this JAX build rejects pipeline_mode=pl.Buffered(1) for
        # the constant-index parameter block (costs only ~328 KiB of VMEM).
        out_slab = _run_pallas(x_flat, packed_params, tb, grid, b_pad, False)

    out_slab = out_slab[:B]
    out = out_slab[:, OUT_COLS[0]:OUT_COLS[1]]
    aux1 = out_slab[:, AUX1_COLS[0]:AUX1_COLS[1]]
    aux2 = out_slab[:, AUX2_COLS[0]:AUX2_COLS[1]]
    return out, aux1, aux2


def init_params(key, hidden=HIDDEN):
    """Deterministic synthetic parameters.

    Linear(in, out): weight stored as (in, out) (pre-transposed from PyTorch's
    (out, in)); bias stored as (1, out).
    """
    keys = jax.random.split(key, 14)

    def lin(kw, kb, fan_in, fan_out):
        bound = 1.0 / jnp.sqrt(fan_in)
        w = jax.random.uniform(kw, (fan_in, fan_out), jnp.float32, -bound, bound)
        b = jax.random.uniform(kb, (1, fan_out), jnp.float32, -bound, bound)
        return w, b

    params = {}
    params["w1_1"], params["b1_1"] = lin(keys[0], keys[1], IN_FEAT, hidden)
    params["w1_2"], params["b1_2"] = lin(keys[2], keys[3], IN_FEAT, hidden)
    params["w2_1"], params["b2_1"] = lin(keys[4], keys[5], hidden, hidden)
    params["w2_2"], params["b2_2"] = lin(keys[6], keys[7], hidden, hidden)
    params["wa1"], params["ba1"] = lin(keys[8], keys[9], hidden, N_CLASSES)
    params["wa2"], params["ba2"] = lin(keys[10], keys[11], hidden, N_CLASSES)
    params["w3"], params["b3"] = lin(keys[12], keys[13], 2 * hidden, N_OUT)
    return params


def _reference(x, params):
    """Pure-JAX reference (mirrors the PyTorch forward)."""
    B = x.shape[0]
    x1 = x[:, 0, :, :].reshape(B, IN_FEAT)
    x2 = x[:, 1, :, :].reshape(B, IN_FEAT)
    act = lambda t: jnp.maximum(t, 0.0)
    h1_1 = act(x1 @ params["w1_1"] + params["b1_1"])
    h1_2 = act(x2 @ params["w1_2"] + params["b1_2"])
    h2_1 = act(h1_1 @ params["w2_1"] + params["b2_1"])
    h2_2 = act(h1_2 @ params["w2_2"] + params["b2_2"])
    aux1 = jax.nn.softmax(h2_1 @ params["wa1"] + params["ba1"], axis=-1)
    aux2 = jax.nn.softmax(h2_2 @ params["wa2"] + params["ba2"], axis=-1)
    out = jnp.concatenate([h2_1, h2_2], axis=-1) @ params["w3"] + params["b3"]
    return out, aux1, aux2


if __name__ == "__main__":
    key = jax.random.PRNGKey(0)
    k_x, k_p = jax.random.split(key)

    B = 8
    x = jax.random.normal(k_x, (B, 2, 14, 14), jnp.float32)
    params = init_params(k_p)
    packed = pack_params(params)

    out, aux1, aux2 = mlp_nosharing_aux(x, packed)
    jax.block_until_ready((out, aux1, aux2))

    ref_out, ref_aux1, ref_aux2 = _reference(x, params)
    assert jnp.allclose(out, ref_out, atol=1e-5, rtol=1e-5)
    assert jnp.allclose(aux1, ref_aux1, atol=1e-5, rtol=1e-5)
    assert jnp.allclose(aux2, ref_aux2, atol=1e-5, rtol=1e-5)

    print("KERNEL_OK")
</pallas_src>

<mosaic_0001>
module attributes {stable_mosaic.version = 11 : i64} {
  func.func @mlp_kernel(%arg0: i32, %arg1: memref<8x392xf32, #tpu.memory_space<vmem>>, %arg2: memref<656x128xf32, #tpu.memory_space<vmem>>, %arg3: memref<8x128xf32, #tpu.memory_space<vmem>>) attributes {dimension_semantics = [#tpu.dimension_semantics<parallel>], iteration_bounds = array<i64: 1>, scalar_prefetch = 0 : i64, scratch_operands = 0 : i64, tpu.core_type = #tpu.core_type<tc>, window_params = [{transform_indices = @transform_0, window_bounds = array<i64: 8, 392>}, {pipeline_mode = #tpu.pipeline_mode<synchronous>, transform_indices = @transform_1, window_bounds = array<i64: 656, 128>}, {transform_indices = @transform_2, window_bounds = array<i64: 8, 128>}]} {
    %c0 = arith.constant 0 : index
    %c0_0 = arith.constant 0 : index
    %0 = vector.load %arg1[%c0, %c0_0] : memref<8x392xf32, #tpu.memory_space<vmem>>, vector<8x392xf32>
    %c0_1 = arith.constant 0 : index
    %c0_2 = arith.constant 0 : index
    %1 = vector.load %arg2[%c0_1, %c0_2] : memref<656x128xf32, #tpu.memory_space<vmem>>, vector<392x128xf32>
    %c392 = arith.constant 392 : index
    %c0_3 = arith.constant 0 : index
    %2 = vector.load %arg2[%c392, %c0_3] : memref<656x128xf32, #tpu.memory_space<vmem>>, vector<128x128xf32>
    %c520 = arith.constant 520 : index
    %c0_4 = arith.constant 0 : index
    %3 = vector.load %arg2[%c520, %c0_4] : memref<656x128xf32, #tpu.memory_space<vmem>>, vector<128x128xf32>
    %c648 = arith.constant 648 : index
    %c0_5 = arith.constant 0 : index
    %4 = vector.load %arg2[%c648, %c0_5] : memref<656x128xf32, #tpu.memory_space<vmem>>, vector<1x128xf32>
    %c649 = arith.constant 649 : index
    %c0_6 = arith.constant 0 : index
    %5 = vector.load %arg2[%c649, %c0_6] : memref<656x128xf32, #tpu.memory_space<vmem>>, vector<1x128xf32>
    %c650 = arith.constant 650 : index
    %c0_7 = arith.constant 0 : index
    %6 = vector.load %arg2[%c650, %c0_7] : memref<656x128xf32, #tpu.memory_space<vmem>>, vector<1x128xf32>
    %cst = arith.constant dense<0.000000e+00> : vector<8x128xf32>
    %7 = tpu.matmul %0, %1, %cst {dimension_numbers = #tpu.dot_dimension_numbers<[1], [0], [0], [1], [0, 0, 1, 1], [], []>} : vector<8x392xf32>, vector<392x128xf32>, vector<8x128xf32> -> vector<8x128xf32>
    %8 = vector.broadcast %4 : vector<1x128xf32> to vector<8x128xf32>
    %9 = arith.addf %7, %8 : vector<8x128xf32>
    %cst_8 = arith.constant 0.000000e+00 : f32
    %10 = vector.broadcast %cst_8 : f32 to vector<8x128xf32>
    %11 = arith.maximumf %9, %10 : vector<8x128xf32>
    %cst_9 = arith.constant dense<0.000000e+00> : vector<8x128xf32>
    %12 = tpu.matmul %11, %2, %cst_9 {dimension_numbers = #tpu.dot_dimension_numbers<[1], [0], [0], [1], [0, 0, 1, 1], [], []>} : vector<8x128xf32>, vector<128x128xf32>, vector<8x128xf32> -> vector<8x128xf32>
    %13 = vector.broadcast %5 : vector<1x128xf32> to vector<8x128xf32>
    %14 = arith.addf %12, %13 : vector<8x128xf32>
    %cst_10 = arith.constant 0.000000e+00 : f32
    %15 = vector.broadcast %cst_10 : f32 to vector<8x128xf32>
    %16 = arith.maximumf %14, %15 : vector<8x128xf32>
    %cst_11 = arith.constant dense<0.000000e+00> : vector<8x128xf32>
    %17 = tpu.matmul %16, %3, %cst_11 {dimension_numbers = #tpu.dot_dimension_numbers<[1], [0], [0], [1], [0, 0, 1, 1], [], []>} : vector<8x128xf32>, vector<128x128xf32>, vector<8x128xf32> -> vector<8x128xf32>
    %18 = vector.broadcast %6 : vector<1x128xf32> to vector<8x128xf32>
    %19 = arith.addf %17, %18 : vector<8x128xf32>
    %20 = tpu.iota {dimensions = array<i32: 1>} : vector<8x128xi32>
    %c0_i32 = arith.constant 0 : i32
    %21 = vector.broadcast %c0_i32 : i32 to vector<8x128xi32>
    %22 = arith.cmpi sge, %20, %21 : vector<8x128xi32>
    %c10_i32 = arith.constant 10 : i32
    %23 = vector.broadcast %c10_i32 : i32 to vector<8x128xi32>
    %24 = arith.cmpi slt, %20, %23 : vector<8x128xi32>
    %25 = arith.andi %22, %24 : vector<8x128xi1>
    %c10_i32_12 = arith.constant 10 : i32
    %26 = vector.broadcast %c10_i32_12 : i32 to vector<8x128xi32>
    %27 = arith.cmpi sge, %20, %26 : vector<8x128xi32>
    %c20_i32 = arith.constant 20 : i32
    %28 = vector.broadcast %c20_i32 : i32 to vector<8x128xi32>
    %29 = arith.cmpi slt, %20, %28 : vector<8x128xi32>
    %30 = arith.andi %27, %29 : vector<8x128xi1>
    %c20_i32_13 = arith.constant 20 : i32
    %31 = vector.broadcast %c20_i32_13 : i32 to vector<8x128xi32>
    %32 = arith.cmpi sge, %20, %31 : vector<8x128xi32>
    %c22_i32 = arith.constant 22 : i32
    %33 = vector.broadcast %c22_i32 : i32 to vector<8x128xi32>
    %34 = arith.cmpi slt, %20, %33 : vector<8x128xi32>
    %35 = arith.andi %32, %34 : vector<8x128xi1>
    %cst_14 = arith.constant -1.000000e+30 : f32
    %36 = vector.broadcast %cst_14 : f32 to vector<8x128xf32>
    %37 = arith.select %25, %19, %36 : vector<8x128xi1>, vector<8x128xf32>
    %cst_15 = arith.constant dense<0xFF800000> : vector<8xf32>
    %38 = vector.multi_reduction <maximumf>, %37, %cst_15 [1] : vector<8x128xf32> to vector<8xf32>
    %39 = vector.shape_cast %38 : vector<8xf32> to vector<8x1xf32>
    %cst_16 = arith.constant -1.000000e+30 : f32
    %40 = vector.broadcast %cst_16 : f32 to vector<8x128xf32>
    %41 = arith.select %30, %19, %40 : vector<8x128xi1>, vector<8x128xf32>
    %cst_17 = arith.constant dense<0xFF800000> : vector<8xf32>
    %42 = vector.multi_reduction <maximumf>, %41, %cst_17 [1] : vector<8x128xf32> to vector<8xf32>
    %43 = vector.shape_cast %42 : vector<8xf32> to vector<8x1xf32>
    %cst_18 = arith.constant 1.000000e+30 : f32
    %44 = vector.shape_cast %43 : vector<8x1xf32> to vector<8x1xf32>
    %45 = vector.broadcast %44 : vector<8x1xf32> to vector<8x128xf32>
    %46 = vector.broadcast %cst_18 : f32 to vector<8x128xf32>
    %47 = arith.select %30, %45, %46 : vector<8x128xi1>, vector<8x128xf32>
    %48 = vector.shape_cast %39 : vector<8x1xf32> to vector<8x1xf32>
    %49 = vector.broadcast %48 : vector<8x1xf32> to vector<8x128xf32>
    %50 = arith.select %25, %49, %47 : vector<8x128xi1>, vector<8x128xf32>
    %51 = arith.subf %19, %50 : vector<8x128xf32>
    %52 = math.exp %51 : vector<8x128xf32>
    %cst_19 = arith.constant 0.000000e+00 : f32
    %53 = vector.broadcast %cst_19 : f32 to vector<8x128xf32>
    %54 = arith.select %25, %52, %53 : vector<8x128xi1>, vector<8x128xf32>
    %cst_20 = arith.constant dense<0.000000e+00> : vector<8xf32>
    %55 = vector.multi_reduction <add>, %54, %cst_20 [1] : vector<8x128xf32> to vector<8xf32>
    %56 = vector.shape_cast %55 : vector<8xf32> to vector<8x1xf32>
    %cst_21 = arith.constant 0.000000e+00 : f32
    %57 = vector.broadcast %cst_21 : f32 to vector<8x128xf32>
    %58 = arith.select %30, %52, %57 : vector<8x128xi1>, vector<8x128xf32>
    %cst_22 = arith.constant dense<0.000000e+00> : vector<8xf32>
    %59 = vector.multi_reduction <add>, %58, %cst_22 [1] : vector<8x128xf32> to vector<8xf32>
    %60 = vector.shape_cast %59 : vector<8xf32> to vector<8x1xf32>
    %cst_23 = arith.constant 1.000000e+00 : f32
    %61 = vector.shape_cast %60 : vector<8x1xf32> to vector<8x1xf32>
    %62 = vector.broadcast %61 : vector<8x1xf32> to vector<8x128xf32>
    %63 = vector.broadcast %cst_23 : f32 to vector<8x128xf32>
    %64 = arith.select %30, %62, %63 : vector<8x128xi1>, vector<8x128xf32>
    %65 = vector.shape_cast %56 : vector<8x1xf32> to vector<8x1xf32>
    %66 = vector.broadcast %65 : vector<8x1xf32> to vector<8x128xf32>
    %67 = arith.select %25, %66, %64 : vector<8x128xi1>, vector<8x128xf32>
    %68 = arith.divf %52, %67 : vector<8x128xf32>
    %cst_24 = arith.constant 0.000000e+00 : f32
    %69 = vector.broadcast %cst_24 : f32 to vector<8x128xf32>
    %70 = arith.select %35, %19, %69 : vector<8x128xi1>, vector<8x128xf32>
    %71 = arith.addf %68, %70 : vector<8x128xf32>
    %c0_25 = arith.constant 0 : index
    %c0_26 = arith.constant 0 : index
    %72 = vector.load %arg3[%c0_25, %c0_26] : memref<8x128xf32, #tpu.memory_space<vmem>>, vector<8x128xf32>
    tpu.vector_store %arg3[%c0_25, %c0_26], %71 {strides = array<i32>} : memref<8x128xf32, #tpu.memory_space<vmem>>, vector<8x128xf32>,
    return
  }
  func.func @transform_0(%arg0: i32) -> (i32, i32) {
    %c0_i32 = arith.constant 0 : i32
    %c0_i32_0 = arith.constant 0 : i32
    return %arg0, %c0_i32 : i32, i32
  }
  func.func @transform_1(%arg0: i32) -> (i32, i32) {
    %c0_i32 = arith.constant 0 : i32
    %c0_i32_0 = arith.constant 0 : i32
    %c0_i32_1 = arith.constant 0 : i32
    return %c0_i32, %c0_i32_0 : i32, i32
  }
  func.func @transform_2(%arg0: i32) -> (i32, i32) {
    %c0_i32 = arith.constant 0 : i32
    %c0_i32_0 = arith.constant 0 : i32
    return %arg0, %c0_i32 : i32, i32
  }
}

module attributes {stable_mosaic.version = 11 : i64} {
  func.func @mlp_kernel(%arg0: i32, %arg1: memref<8x392xf32, #tpu.memory_space<vmem>>, %arg2: memref<656x128xf32, #tpu.memory_space<vmem>>, %arg3: memref<8x128xf32, #tpu.memory_space<vmem>>) attributes {dimension_semantics = [#tpu.dimension_semantics<parallel>], iteration_bounds = array<i64: 1>, scalar_prefetch = 0 : i64, scratch_operands = 0 : i64, tpu.core_type = #tpu.core_type<tc>, window_params = [{transform_indices = @transform_0, window_bounds = array<i64: 8, 392>}, {pipeline_mode = #tpu.pipeline_mode<synchronous>, transform_indices = @transform_1, window_bounds = array<i64: 656, 128>}, {transform_indices = @transform_2, window_bounds = array<i64: 8, 128>}]} {
    %c0 = arith.constant 0 : index
    %c0_0 = arith.constant 0 : index
    %0 = vector.load %arg1[%c0, %c0_0] : memref<8x392xf32, #tpu.memory_space<vmem>>, vector<8x392xf32>
    %c0_1 = arith.constant 0 : index
    %c0_2 = arith.constant 0 : index
    %1 = vector.load %arg2[%c0_1, %c0_2] : memref<656x128xf32, #tpu.memory_space<vmem>>, vector<392x128xf32>
    %c392 = arith.constant 392 : index
    %c0_3 = arith.constant 0 : index
    %2 = vector.load %arg2[%c392, %c0_3] : memref<656x128xf32, #tpu.memory_space<vmem>>, vector<128x128xf32>
    %c520 = arith.constant 520 : index
    %c0_4 = arith.constant 0 : index
    %3 = vector.load %arg2[%c520, %c0_4] : memref<656x128xf32, #tpu.memory_space<vmem>>, vector<128x128xf32>
    %c648 = arith.constant 648 : index
    %c0_5 = arith.constant 0 : index
    %4 = vector.load %arg2[%c648, %c0_5] : memref<656x128xf32, #tpu.memory_space<vmem>>, vector<1x128xf32>
    %c649 = arith.constant 649 : index
    %c0_6 = arith.constant 0 : index
    %5 = vector.load %arg2[%c649, %c0_6] : memref<656x128xf32, #tpu.memory_space<vmem>>, vector<1x128xf32>
    %c650 = arith.constant 650 : index
    %c0_7 = arith.constant 0 : index
    %6 = vector.load %arg2[%c650, %c0_7] : memref<656x128xf32, #tpu.memory_space<vmem>>, vector<1x128xf32>
    %cst = arith.constant dense<0.000000e+00> : vector<8x128xf32>
    %7 = tpu.matmul %0, %1, %cst {dimension_numbers = #tpu.dot_dimension_numbers<[1], [0], [0], [1], [0, 0, 1, 1], [], []>} : vector<8x392xf32>, vector<392x128xf32>, vector<8x128xf32> -> vector<8x128xf32>
    %8 = vector.broadcast %4 : vector<1x128xf32> to vector<8x128xf32>
    %9 = arith.addf %7, %8 : vector<8x128xf32>
    %cst_8 = arith.constant 0.000000e+00 : f32
    %10 = vector.broadcast %cst_8 : f32 to vector<8x128xf32>
    %11 = arith.maximumf %9, %10 : vector<8x128xf32>
    %cst_9 = arith.constant dense<0.000000e+00> : vector<8x128xf32>
    %12 = tpu.matmul %11, %2, %cst_9 {dimension_numbers = #tpu.dot_dimension_numbers<[1], [0], [0], [1], [0, 0, 1, 1], [], []>} : vector<8x128xf32>, vector<128x128xf32>, vector<8x128xf32> -> vector<8x128xf32>
    %13 = vector.broadcast %5 : vector<1x128xf32> to vector<8x128xf32>
    %14 = arith.addf %12, %13 : vector<8x128xf32>
    %cst_10 = arith.constant 0.000000e+00 : f32
    %15 = vector.broadcast %cst_10 : f32 to vector<8x128xf32>
    %16 = arith.maximumf %14, %15 : vector<8x128xf32>
    %cst_11 = arith.constant dense<0.000000e+00> : vector<8x128xf32>
    %17 = tpu.matmul %16, %3, %cst_11 {dimension_numbers = #tpu.dot_dimension_numbers<[1], [0], [0], [1], [0, 0, 1, 1], [], []>} : vector<8x128xf32>, vector<128x128xf32>, vector<8x128xf32> -> vector<8x128xf32>
    %18 = vector.broadcast %6 : vector<1x128xf32> to vector<8x128xf32>
    %19 = arith.addf %17, %18 : vector<8x128xf32>
    %20 = tpu.iota {dimensions = array<i32: 1>} : vector<8x128xi32>
    %c0_i32 = arith.constant 0 : i32
    %21 = vector.broadcast %c0_i32 : i32 to vector<8x128xi32>
    %22 = arith.cmpi sge, %20, %21 : vector<8x128xi32>
    %c10_i32 = arith.constant 10 : i32
    %23 = vector.broadcast %c10_i32 : i32 to vector<8x128xi32>
    %24 = arith.cmpi slt, %20, %23 : vector<8x128xi32>
    %25 = arith.andi %22, %24 : vector<8x128xi1>
    %c10_i32_12 = arith.constant 10 : i32
    %26 = vector.broadcast %c10_i32_12 : i32 to vector<8x128xi32>
    %27 = arith.cmpi sge, %20, %26 : vector<8x128xi32>
    %c20_i32 = arith.constant 20 : i32
    %28 = vector.broadcast %c20_i32 : i32 to vector<8x128xi32>
    %29 = arith.cmpi slt, %20, %28 : vector<8x128xi32>
    %30 = arith.andi %27, %29 : vector<8x128xi1>
    %c20_i32_13 = arith.constant 20 : i32
    %31 = vector.broadcast %c20_i32_13 : i32 to vector<8x128xi32>
    %32 = arith.cmpi sge, %20, %31 : vector<8x128xi32>
    %c22_i32 = arith.constant 22 : i32
    %33 = vector.broadcast %c22_i32 : i32 to vector<8x128xi32>
    %34 = arith.cmpi slt, %20, %33 : vector<8x128xi32>
    %35 = arith.andi %32, %34 : vector<8x128xi1>
    %cst_14 = arith.constant -1.000000e+30 : f32
    %36 = vector.broadcast %cst_14 : f32 to vector<8x128xf32>
    %37 = arith.select %25, %19, %36 : vector<8x128xi1>, vector<8x128xf32>
    %cst_15 = arith.constant dense<0xFF800000> : vector<8xf32>
    %38 = vector.multi_reduction <maximumf>, %37, %cst_15 [1] : vector<8x128xf32> to vector<8xf32>
    %39 = vector.shape_cast %38 : vector<8xf32> to vector<8x1xf32>
    %cst_16 = arith.constant -1.000000e+30 : f32
    %40 = vector.broadcast %cst_16 : f32 to vector<8x128xf32>
    %41 = arith.select %30, %19, %40 : vector<8x128xi1>, vector<8x128xf32>
    %cst_17 = arith.constant dense<0xFF800000> : vector<8xf32>
    %42 = vector.multi_reduction <maximumf>, %41, %cst_17 [1] : vector<8x128xf32> to vector<8xf32>
    %43 = vector.shape_cast %42 : vector<8xf32> to vector<8x1xf32>
    %cst_18 = arith.constant 1.000000e+30 : f32
    %44 = vector.shape_cast %43 : vector<8x1xf32> to vector<8x1xf32>
    %45 = vector.broadcast %44 : vector<8x1xf32> to vector<8x128xf32>
    %46 = vector.broadcast %cst_18 : f32 to vector<8x128xf32>
    %47 = arith.select %30, %45, %46 : vector<8x128xi1>, vector<8x128xf32>
    %48 = vector.shape_cast %39 : vector<8x1xf32> to vector<8x1xf32>
    %49 = vector.broadcast %48 : vector<8x1xf32> to vector<8x128xf32>
    %50 = arith.select %25, %49, %47 : vector<8x128xi1>, vector<8x128xf32>
    %51 = arith.subf %19, %50 : vector<8x128xf32>
    %52 = math.exp %51 : vector<8x128xf32>
    %cst_19 = arith.constant 0.000000e+00 : f32
    %53 = vector.broadcast %cst_19 : f32 to vector<8x128xf32>
    %54 = arith.select %25, %52, %53 : vector<8x128xi1>, vector<8x128xf32>
    %cst_20 = arith.constant dense<0.000000e+00> : vector<8xf32>
    %55 = vector.multi_reduction <add>, %54, %cst_20 [1] : vector<8x128xf32> to vector<8xf32>
    %56 = vector.shape_cast %55 : vector<8xf32> to vector<8x1xf32>
    %cst_21 = arith.constant 0.000000e+00 : f32
    %57 = vector.broadcast %cst_21 : f32 to vector<8x128xf32>
    %58 = arith.select %30, %52, %57 : vector<8x128xi1>, vector<8x128xf32>
    %cst_22 = arith.constant dense<0.000000e+00> : vector<8xf32>
    %59 = vector.multi_reduction <add>, %58, %cst_22 [1] : vector<8x128xf32> to vector<8xf32>
    %60 = vector.shape_cast %59 : vector<8xf32> to vector<8x1xf32>
    %cst_23 = arith.constant 1.000000e+00 : f32
    %61 = vector.shape_cast %60 : vector<8x1xf32> to vector<8x1xf32>
    %62 = vector.broadcast %61 : vector<8x1xf32> to vector<8x128xf32>
    %63 = vector.broadcast %cst_23 : f32 to vector<8x128xf32>
    %64 = arith.select %30, %62, %63 : vector<8x128xi1>, vector<8x128xf32>
    %65 = vector.shape_cast %56 : vector<8x1xf32> to vector<8x1xf32>
    %66 = vector.broadcast %65 : vector<8x1xf32> to vector<8x128xf32>
    %67 = arith.select %25, %66, %64 : vector<8x128xi1>, vector<8x128xf32>
    %68 = arith.divf %52, %67 : vector<8x128xf32>
    %cst_24 = arith.constant 0.000000e+00 : f32
    %69 = vector.broadcast %cst_24 : f32 to vector<8x128xf32>
    %70 = arith.select %35, %19, %69 : vector<8x128xi1>, vector<8x128xf32>
    %71 = arith.addf %68, %70 : vector<8x128xf32>
    %c0_25 = arith.constant 0 : index
    %c0_26 = arith.constant 0 : index
    %72 = vector.load %arg3[%c0_25, %c0_26] : memref<8x128xf32, #tpu.memory_space<vmem>>, vector<8x128xf32>
    tpu.vector_store %arg3[%c0_25, %c0_26], %71 {strides = array<i32>} : memref<8x128xf32, #tpu.memory_space<vmem>>, vector<8x128xf32>,
    return
  }
  func.func @transform_0(%arg0: i32) -> (i32, i32) {
    %c0_i32 = arith.constant 0 : i32
    %c0_i32_0 = arith.constant 0 : i32
    return %arg0, %c0_i32 : i32, i32
  }
  func.func @transform_1(%arg0: i32) -> (i32, i32) {
    %c0_i32 = arith.constant 0 : i32
    %c0_i32_0 = arith.constant 0 : i32
    %c0_i32_1 = arith.constant 0 : i32
    return %c0_i32, %c0_i32_0 : i32, i32
  }
  func.func @transform_2(%arg0: i32) -> (i32, i32) {
    %c0_i32 = arith.constant 0 : i32
    %c0_i32_0 = arith.constant 0 : i32
    return %arg0, %c0_i32 : i32, i32
  }
}

</mosaic_0001>

<bundles_post_ra>
// kernel: tpu_custom_call.1
= control target key start
LH: loop header
LB: loop body
LE: loop exit
PB: predicated region body
PF: predicated region fallthrough
CT: control target
= control target key end

     0   :  { %7 = vsyncpa [#allocation3], 0  ;;  %s461_s0 = inlined_call_operand.hbm [shape: f32[8,392], index: 0, kind: input, shape index: {}]   ;;  %s462_s1 = inlined_call_operand.hbm [shape: f32[656,128], index: 1, kind: input, shape index: {}]   ;;  %s463_s2 = inlined_call_operand.hbm [shape: f32[8,128], index: 2, kind: output, shape index: {}]  }
   0x1   :  { %8 = vsyncpa [#allocation6], 0 }
   0x2   :  { %9 = vsyncpa [#allocation4], 0  ;;  %s15_s11 = sshll.u32 %s461_s0, 4  ;;  %s416_s12 = smov [#allocation2]   ;;  %s16_s11 = int_to_ptr.hbm [resolvable:$true] %s15_s11 }
   0x3   :  { %s17_s13 = sshll.u32 %s416_s12, 4  ;;  %s25_s16 = sshll.u32 %s462_s1, 4  ;;  %s18_s13 = int_to_ptr.vmem [resolvable:$true] %s17_s13  ;;  %s26_s16 = int_to_ptr.hbm [resolvable:$true] %s25_s16 }
   0x4   :  { %20 = dma.hbm_to_vmem [thread:$0]  %s16_s11, 512, %s18_s13, [#allocation3]  }
   0x5   :  { %s417_s17 = smov [#allocation5]   ;;  %s418_s19 = smov 128  }
   0x6   :  { %s27_s18 = sshll.u32 %s417_s17, 4  ;;  %s419_s20 = smov 8   ;;  %s28_s18 = int_to_ptr.vmem [resolvable:$true] %s27_s18 }
   0x7   :  { %33 = dma.hbm_to_vmem [thread:$0]  %s26_s16, 10496, %s28_s18, [#allocation6], %s418_s19, %s418_s19, %s419_s20  }
   0x8   :  { %410 = dma.done.wait [#allocation3], 512  }
   0x9   :  { %411 = vsyncadd [#allocation3], 4294966784 }
   0xa   :  { %412 = dma.done.wait [#allocation6], 10496  }
   0xb   :  { %413 = vsyncadd [#allocation6], 4294956800  ;;  %v93_v0 = vld [vmem:[#allocation5 + $0x178] sm:$0xff]  ;;  %v92_v2 = vld [vmem:[#allocation5 + $0x170] sm:$0xff]  ;;  %vm131_vm0 = vcmask 64512   ;;  %s420_s0 = smov [#allocation7]  }
   0xc   :  { %v61_v1 = vld [vmem:[#allocation5 + $0x78] sm:$0xff]  ;;  %175 = vmatpush.msra.mxu2 %v93_v0  ;;  %v60_v3 = vld [vmem:[#allocation5 + $0x70] sm:$0xff]  ;;  %v91_v5 = vld [vmem:[#allocation5 + $0x168] sm:$0xff]  ;;  %s312_s1 = sshll.u32 %s420_s0, 4  ;;  %s314_s23 = sshll.u32 %s463_s2, 4  ;;  %s313_s1 = int_to_ptr.vmem [resolvable:$true] %s312_s1  ;;  %s315_s23 = int_to_ptr.hbm [resolvable:$true] %s314_s23 }
   0xd   :  { %135 = vmatpush.msra.mxu0 %v61_v1  ;;  %v77_v4 = vld [vmem:[#allocation5 + $0xf8] sm:$0xff]  ;;  %v59_v6 = vld [vmem:[#allocation5 + $0x68] sm:$0xff]  ;;  %v76_v7 = vld [vmem:[#allocation5 + $0xf0] sm:$0xff] }
   0xe   :  { %155 = vmatpush.msra.mxu1 %v77_v4  ;;  %176 = vmatpush.msra.mxu2 %v92_v2  ;;  %v75_v8 = vld [vmem:[#allocation5 + $0xe8] sm:$0xff]  ;;  %v90_v9 = vld [vmem:[#allocation5 + $0x160] sm:$0xff]  ;;  %v89_v12 = vld [vmem:[#allocation5 + $0x158] sm:$0xff] }
   0xf   :  { %136 = vmatpush.msra.mxu0 %v60_v3  ;;  %v58_v10 = vld [vmem:[#allocation5 + $0x60] sm:$0xff]  ;;  %v57_v13 = vld [vmem:[#allocation5 + $0x58] sm:$0xff]  ;;  %v88_v15 = vld [vmem:[#allocation5 + $0x150] sm:$0xff] }
  0x10   :  { %156 = vmatpush.msra.mxu1 %v76_v7  ;;  %177 = vmatpush.msra.mxu2 %v91_v5  ;;  %v74_v11 = vld [vmem:[#allocation5 + $0xe0] sm:$0xff]  ;;  %v73_v14 = vld [vmem:[#allocation5 + $0xd8] sm:$0xff]  ;;  %v56_v16 = vld [vmem:[#allocation5 + $0x50] sm:$0xff] }
  0x11   :  { %137 = vmatpush.msra.mxu0 %v59_v6  ;;  %v72_v17 = vld [vmem:[#allocation5 + $0xd0] sm:$0xff]  ;;  %v87_v18 = vld [vmem:[#allocation5 + $0x148] sm:$0xff]  ;;  %v86_v21 = vld [vmem:[#allocation5 + $0x140] sm:$0xff] }
  0x12   :  { %157 = vmatpush.msra.mxu1 %v75_v8  ;;  %178 = vmatpush.msra.mxu2 %v90_v9  ;;  %v55_v19 = vld [vmem:[#allocation5 + $0x48] sm:$0xff]  ;;  %v54_v22 = vld [vmem:[#allocation5 + $0x40] sm:$0xff]  ;;  %v85_v24 = vld [vmem:[#allocation5 + $0x138] sm:$0xff] }
  0x13   :  { %138 = vmatpush.msra.mxu0 %v58_v10  ;;  %v71_v20 = vld [vmem:[#allocation5 + $0xc8] sm:$0xff]  ;;  %v70_v23 = vld [vmem:[#allocation5 + $0xc0] sm:$0xff]  ;;  %v53_v25 = vld [vmem:[#allocation5 + $0x38] sm:$0xff] }
  0x14   :  { %158 = vmatpush.msra.mxu1 %v74_v11  ;;  %179 = vmatpush.msra.mxu2 %v89_v12  ;;  %v69_v26 = vld [vmem:[#allocation5 + $0xb8] sm:$0xff]  ;;  %v84_v27 = vld [vmem:[#allocation5 + $0x130] sm:$0xff]  ;;  %v94_v29 = vld [vmem:[#allocation5 + $0x180] sm:$0xff] }
  0x15   :  { %139 = vmatpush.msra.mxu0 %v57_v13  ;;  %v52_v28 = vld [vmem:[#allocation5 + $0x30] sm:$0xff]  ;;  %v45_v31 = vld [vmem:[#allocation2 + $0x18] sm:$0xff]  ;;  %v83_v32 = vld [vmem:[#allocation5 + $0x128] sm:$0xff]  ;;  %210 = vmatpush.msra.mxu3 %v94_v29 }
  0x16   :  { %159 = vmatpush.msra.mxu1 %v73_v14  ;;  %180 = vmatpush.msra.mxu2 %v88_v15  ;;  %v68_v30 = vld [vmem:[#allocation5 + $0xb0] sm:$0xff]  ;;  %v51_v33 = vld [vmem:[#allocation5 + $0x28] sm:$0xff]  ;;  %v110_v35 = vld [vmem:[#allocation5 + $0x200] sm:$0xff] }
  0x17   :  { %140 = vmatpush.msra.mxu0 %v56_v16  ;;  %v67_v34 = vld [vmem:[#allocation5 + $0xa8] sm:$0xff]  ;;  %v82_v36 = vld [vmem:[#allocation5 + $0x120] sm:$0xff]  ;;  %325 = vmatmul.msk.f32.vlgmr.msra.gmra.mxu3 %vm131_vm0, %v45_v31  ;;  %v109_v39 = vld [vmem:[#allocation5 + $0x1f8] sm:$0xff] }
  0x18   :  { %160 = vmatpush.msra.mxu1 %v72_v17  ;;  %181 = vmatpush.msra.mxu2 %v87_v18  ;;  %v50_v37 = vld [vmem:[#allocation5 + $0x20] sm:$0xff]  ;;  %v81_v40 = vld [vmem:[#allocation5 + $0x118] sm:$0xff]  ;;  %v108_v43 = vld [vmem:[#allocation5 + $0x1f0] sm:$0xff] }
  0x19   :  { %141 = vmatpush.msra.mxu0 %v55_v19  ;;  %v66_v38 = vld [vmem:[#allocation5 + $0xa0] sm:$0xff]  ;;  %v49_v41 = vld [vmem:[#allocation5 + $0x18] sm:$0xff]  ;;  %217 = vmatpush.msrb.mxu3 %v110_v35  ;;  %v80_v44 = vld [vmem:[#allocation5 + $0x110] sm:$0xff]  ;;  %v259_v35 = vlaneseq }
  0x1a   :  { %161 = vmatpush.msra.mxu1 %v71_v20  ;;  %182 = vmatpush.msra.mxu2 %v86_v21  ;;  %v65_v42 = vld [vmem:[#allocation5 + $0x98] sm:$0xff]  ;;  %v48_v45 = vld [vmem:[#allocation5 + $0x10] sm:$0xff]  ;;  %v107_v47 = vld [vmem:[#allocation5 + $0x1e8] sm:$0xff] }
  0x1b   :  { %142 = vmatpush.msra.mxu0 %v54_v22  ;;  %218 = vmatpush.msrb.mxu3 %v109_v39  ;;  %v64_v46 = vld [vmem:[#allocation5 + $0x90] sm:$0xff]  ;;  %v79_v48 = vld [vmem:[#allocation5 + $0x108] sm:$0xff]  ;;  %v106_v51 = vld [vmem:[#allocation5 + $0x1e0] sm:$0xff] }
  0x1c   :  { %162 = vmatpush.msra.mxu1 %v70_v23  ;;  %183 = vmatpush.msra.mxu2 %v85_v24  ;;  %v47_v49 = vld [vmem:[#allocation5 + $0x8] sm:$0xff]  ;;  %v78_v52 = vld [vmem:[#allocation5 + $0x100] sm:$0xff]  ;;  %v44_v54 = vld [vmem:[#allocation2 + $0x10] sm:$0xff] }
  0x1d   :  { %143 = vmatpush.msra.mxu0 %v53_v25  ;;  %219 = vmatpush.msrb.mxu3 %v108_v43  ;;  %v63_v50 = vld [vmem:[#allocation5 + $0x88] sm:$0xff]  ;;  %v46_v53 = vld [vmem:[#allocation5] sm:$0xff]  ;;  %v105_v57 = vld [vmem:[#allocation5 + $0x1d8] sm:$0xff] }
  0x1e   :  { %163 = vmatpush.msra.mxu1 %v69_v26  ;;  %184 = vmatpush.msra.mxu2 %v84_v27  ;;  %v42_v55 = vld [vmem:[#allocation2] sm:$0xff]  ;;  %v43_v58 = vld [vmem:[#allocation2 + $0x8] sm:$0xff]  ;;  %v104_v59 = vld [vmem:[#allocation5 + $0x1d0] sm:$0xff] }
  0x1f   :  { %144 = vmatpush.msra.mxu0 %v52_v28  ;;  %220 = vmatpush.msrb.mxu3 %v107_v47  ;;  %v62_v56 = vld [vmem:[#allocation5 + $0x80] sm:$0xff]  ;;  %v103_v60 = vld [vmem:[#allocation5 + $0x1c8] sm:$0xff]  ;;  %v101_v62 = vld [vmem:[#allocation5 + $0x1b8] sm:$0xff] }
  0x20   :  { %164 = vmatpush.msra.mxu1 %v68_v30  ;;  %185 = vmatpush.msra.mxu2 %v83_v32  ;;  %v102_v61 = vld [vmem:[#allocation5 + $0x1c0] sm:$0xff]  ;;  %v100_v63 = vld [vmem:[#allocation5 + $0x1b0] sm:$0xff]  ;;  %v99_v0 = vld [vmem:[#allocation5 + $0x1a8] sm:$0xff] }
  0x21   :  { %145 = vmatpush.msra.mxu0 %v51_v33  ;;  %221 = vmatpush.msrb.mxu3 %v106_v51  ;;  %v98_v1 = vld [vmem:[#allocation5 + $0x1a0] sm:$0xff]  ;;  %v97_v2 = vld [vmem:[#allocation5 + $0x198] sm:$0xff]  ;;  %v96_v3 = vld [vmem:[#allocation5 + $0x190] sm:$0xff] }
  0x22   :  { %165 = vmatpush.msra.mxu1 %v67_v34  ;;  %186 = vmatpush.msra.mxu2 %v82_v36  ;;  %v95_v4 = vld [vmem:[#allocation5 + $0x188] sm:$0xff]  ;;  %v126_v5 = vld [vmem:[#allocation5 + $0x280] sm:$0xff]  ;;  %v125_v6 = vld [vmem:[#allocation5 + $0x278] sm:$0xff]  ;;  %v260_v36 = vand.u32 127, %v259_v35 }
  0x23   :  { %146 = vmatpush.msra.mxu0 %v50_v37  ;;  %222 = vmatpush.msrb.mxu3 %v105_v57  ;;  %v124_v7 = vld [vmem:[#allocation5 + $0x270] sm:$0xff]  ;;  %v123_v8 = vld [vmem:[#allocation5 + $0x268] sm:$0xff]  ;;  %v122_v9 = vld [vmem:[#allocation5 + $0x260] sm:$0xff] }
  0x24   :  { %166 = vmatpush.msra.mxu1 %v66_v38  ;;  %187 = vmatpush.msra.mxu2 %v81_v40  ;;  %v121_v10 = vld [vmem:[#allocation5 + $0x258] sm:$0xff]  ;;  %v120_v11 = vld [vmem:[#allocation5 + $0x250] sm:$0xff]  ;;  %v119_v12 = vld [vmem:[#allocation5 + $0x248] sm:$0xff]  ;;  %vm264_vm1 = vcmp.ge.s32.totalorder %v260_v36, 10  ;;  %vm265_vm2 = vcmp.lt.s32.totalorder %v260_v36, 20  ;;  %vm262_vm4 = vcmp.lt.s32.totalorder %v260_v36, 10 }
  0x25   :  { %147 = vmatpush.msra.mxu0 %v49_v41  ;;  %223 = vmatpush.msrb.mxu3 %v104_v59  ;;  %v118_v13 = vld [vmem:[#allocation5 + $0x240] sm:$0xff]  ;;  %v331_v14 = vld [vmem:[#allocation5 + $0x288] ss:$0 sm:$0xff]  ;;  %v117_v15 = vld [vmem:[#allocation5 + $0x238] sm:$0xff]  ;;  %vm267_vm6 = vcmp.ge.s32.totalorder %v260_v36, 20  ;;  %vm268_vm7 = vcmp.lt.s32.totalorder %v260_v36, 22 }
  0x26   :  { %167 = vmatpush.msra.mxu1 %v65_v42  ;;  %188 = vmatpush.msra.mxu2 %v80_v44  ;;  %v116_v16 = vld [vmem:[#allocation5 + $0x230] sm:$0xff]  ;;  %v115_v19 = vld [vmem:[#allocation5 + $0x228] sm:$0xff]  ;;  %v114_v22 = vld [vmem:[#allocation5 + $0x220] sm:$0xff] }
  0x27   :  { %148 = vmatpush.msra.mxu0 %v48_v45  ;;  %224 = vmatpush.msrb.mxu3 %v103_v60  ;;  %v113_v28 = vld [vmem:[#allocation5 + $0x218] sm:$0xff]  ;;  %v112_v29 = vld [vmem:[#allocation5 + $0x210] sm:$0xff]  ;;  %v111_v30 = vld [vmem:[#allocation5 + $0x208] sm:$0xff] }
  0x28   :  { %168 = vmatpush.msra.mxu1 %v64_v46  ;;  %189 = vmatpush.msra.mxu2 %v79_v48  ;;  %v332_v31 = vld [vmem:[#allocation5 + $0x289] ss:$0 sm:$0xff]  ;;  %v333_v37 = vld [vmem:[#allocation5 + $0x28a] ss:$0 sm:$0xff]  ;;  %vm442_vm3 = vmand %vm264_vm1, %vm265_vm2 }
  0x29   :  { %149 = vmatpush.msra.mxu0 %v47_v49  ;;  %225 = vmatpush.msrb.mxu3 %v102_v61  ;;  %vm269_vm11 = vmand %vm267_vm6, %vm268_vm7 }
  0x2a   :  { %169 = vmatpush.msra.mxu1 %v63_v50  ;;  %190 = vmatpush.msra.mxu2 %v78_v52 }
  0x2b   :  { %150 = vmatpush.msra.mxu0 %v46_v53  ;;  %191 = vmatmul.f32.vlgmr.msra.gmra.mxu2 %v44_v54 }
  0x2c   :  { %151 = vmatmul.f32.vlgmr.msra.gmra.mxu0 %v42_v55  ;;  %170 = vmatpush.msra.mxu1 %v62_v56 }
  0x2d   :  { %171 = vmatmul.f32.vlgmr.msra.gmra.mxu1 %v43_v58  ;;  %226 = vmatpush.msrb.mxu3 %v101_v62 }
  0x2e   :  { %239 = vmatpush.msrb.mxu0 %v126_v5 }
  0x2f   :  { %227 = vmatpush.msrb.mxu3 %v100_v63 }
  0x30   :  { %240 = vmatpush.msrb.mxu0 %v125_v6 }
  0x31   :  { %228 = vmatpush.msrb.mxu3 %v99_v0 }
  0x32   :  { %241 = vmatpush.msrb.mxu0 %v124_v7 }
  0x33   :  { %229 = vmatpush.msrb.mxu3 %v98_v1 }
  0x34   :  { %242 = vmatpush.msrb.mxu0 %v123_v8 }
  0x35   :  { %230 = vmatpush.msrb.mxu3 %v97_v2 }
  0x36   :  { %243 = vmatpush.msrb.mxu0 %v122_v9 }
  0x37   :  { %231 = vmatpush.msrb.mxu3 %v96_v3 }
  0x38   :  { %244 = vmatpush.msrb.mxu0 %v121_v10 }
  0x39   :  { %232 = vmatpush.msrb.mxu3 %v95_v4 }
  0x3a   :  { %245 = vmatpush.msrb.mxu0 %v120_v11 }
  0x3c   :  { %246 = vmatpush.msrb.mxu0 %v119_v12 }
  0x3e   :  { %247 = vmatpush.msrb.mxu0 %v118_v13 }
  0x40   :  { %248 = vmatpush.msrb.mxu0 %v117_v15 }
  0x42   :  { %249 = vmatpush.msrb.mxu0 %v116_v16 }
  0x44   :  { %250 = vmatpush.msrb.mxu0 %v115_v19 }
  0x46   :  { %251 = vmatpush.msrb.mxu0 %v114_v22 }
  0x48   :  { %252 = vmatpush.msrb.mxu0 %v113_v28 }
  0x4a   :  { %253 = vmatpush.msrb.mxu0 %v112_v29 }
  0x4c   :  { %254 = vmatpush.msrb.mxu0 %v111_v30 }
  0x9a   :  { %v212_v24 = vpop.f32.mrf.mxu3 }
  0xa9   :  { %v152_v17 = vpop.f32.mrf.mxu0 }
  0xaa   :  { %v153_v18 = vadd.f32 %v331_v14, %v152_v17  ;;  %v172_v20 = vpop.f32.mrf.mxu1 }
  0xac   :  { %v173_v21 = vadd.f32 %v172_v20, %v153_v18 }
  0xae   :  { %v192_v23 = vpop.f32.mrf.mxu2 }
  0xaf   :  { %v193_v25 = vadd.f32 %v192_v23, %v173_v21 }
  0xb1   :  { %v213_v26 = vadd.f32 %v212_v24, %v193_v25 }
  0xb3   :  { %v215_v27 = vmax.f32 %v213_v26, 0.0 }
  0xb5   :  { %233 = vmatmul.f32.vlgmr.msrb.gmra.mxu3 %v215_v27 }
 0x138   :  { %v234_v32 = vpop.f32.mrf.mxu3 }
 0x139   :  { %v235_v33 = vadd.f32 %v332_v31, %v234_v32 }
 0x13b   :  { %v237_v34 = vmax.f32 %v235_v33, 0.0 }
 0x13d   :  { %255 = vmatmul.f32.vlgmr.msrb.gmra.mxu0 %v237_v34 }
 0x1ba   :  { %v256_v38 = vpop.f32.mrf.mxu0 }
 0x1bb   :  { %v257_v40 = vadd.f32 %v333_v37, %v256_v38 }
 0x1bd   :  { %v273_v41 = vsel %vm442_vm3, %v257_v40, -1e+30  ;;  %v270_v42 = vsel %vm262_vm4, %v257_v40, -1e+30  ;;  %v304_v3 = vsel %vm269_vm11, %v257_v40, 0.0 }
 0x1be   :  { %274 = vmax.xlane.f32.xlu0 %v273_v41 }
 0x1c6   :  { %271 = vmax.xlane.f32.xlu0 %v270_v42 }
 0x231   :  { %v275_v43 = vpop.xlane.xlu0 %274 }
 0x232   :  { %v276_v44 = vsel %vm442_vm3, %v275_v43, 1e+30 }
 0x239   :  { %v272_v45 = vpop.xlane.xlu0 %271 }
 0x23a   :  { %v277_v46 = vsel %vm262_vm4, %v272_v45, %v276_v44 }
 0x23b   :  { %v278_v47 = vsub.f32 %v257_v40, %v277_v46 }
 0x23d   :  { %v279_v48 = vmul.f32 1.442695, %v278_v47 }
 0x23f   :  { %334 = vpow2.f32 %v279_v48 }
 0x245   :  { %v335_v49 = vpop.eup %334 }
 0x246   :  { %v284_v50 = vsel %vm442_vm3, %v335_v49, 0.0  ;;  %v281_v51 = vsel %vm262_vm4, %v335_v49, 0.0 }
 0x247   :  { %285 = vadd.xlane.f32.xlu1 %v284_v50 }
 0x24f   :  { %282 = vadd.xlane.f32.xlu1 %v281_v51 }
 0x2ba   :  { %v286_v52 = vpop.xlane.xlu1 %285 }
 0x2bb   :  { %v287_v53 = vsel %vm442_vm3, %v286_v52, 1.0 }
 0x2c2   :  { %v283_v54 = vpop.xlane.xlu1 %282 }
 0x2c3   :  { %v288_v55 = vsel %vm262_vm4, %v283_v54, %v287_v53 }
 0x2c4   :  { %336 = vrcp.f32 %v288_v55  ;;  %v300_v59 = vand.u32 2147483648, %v288_v55  ;;  %v298_v61 = vand.u32 2147483647, %v288_v55  ;;  %vm294_vm8 = vweird.f32 %v288_v55 }
 0x2c6   :  { %v301_v63 = vor.u32 1.1754944e-38, %v300_v59  ;;  %vm299_vm10 = vcmp.eq.f32.partialorder %v298_v61, 8.507059e+37 }
 0x2ca   :  { %v337_v56 = vpop.eup %336 }
 0x2cb   :  { %v290_v57 = vmul.f32 %v337_v56, %v288_v55  ;;  %vm295_vm5 = vweird.f32 %v337_v56 }
 0x2cc   :  { %vm296_vm9 = vmor %vm294_vm8, %vm295_vm5 }
 0x2cd   :  { %v291_v58 = vsub.f32 1.0, %v290_v57 }
 0x2cf   :  { %v292_v60 = vmul.f32 %v337_v56, %v291_v58 }
 0x2d1   :  { %v293_v62 = vadd.f32 %v337_v56, %v292_v60 }
 0x2d3   :  { %v297_v0 = vsel %vm296_vm9, %v337_v56, %v293_v62 }
 0x2d4   :  { %v302_v1 = vsel %vm299_vm10, %v301_v63, %v297_v0 }
 0x2d5   :  { %v303_v2 = vmul.f32 %v335_v49, %v302_v1 }
 0x2d7   :  { %v305_v4 = vadd.f32 %v304_v3, %v303_v2 }
 0x2d9   :  { %306 = vst [vmem:[#allocation7] sm:$0xff] %v305_v4 }
 0x2da   :  { %317 = dma.vmem_to_hbm [thread:$0]  %s313_s1, 128, %s315_s23, [#allocation4]  }
 0x2db   :  { %414 = dma.done.wait [#allocation4], 128  }
 0x2dc   :  { %415 = vsyncadd [#allocation4], 4294967168 }
 0x2dd   :  { %322 = vsyncpa [#allocation3], 1 }
 0x2de   :  { %323 = vsyncpa [#allocation6], 1 }
 0x2df   :  { %324 = vsyncpa [#allocation4], 1 }

// kernel: tpu_custom_call.1
= control target key start
LH: loop header
LB: loop body
LE: loop exit
PB: predicated region body
PF: predicated region fallthrough
CT: control target
= control target key end

     0   :  { %7 = vsyncpa [#allocation3], 0  ;;  %s461_s0 = inlined_call_operand.hbm [shape: f32[8,392], index: 0, kind: input, shape index: {}]   ;;  %s462_s1 = inlined_call_operand.hbm [shape: f32[656,128], index: 1, kind: input, shape index: {}]   ;;  %s463_s2 = inlined_call_operand.hbm [shape: f32[8,128], index: 2, kind: output, shape index: {}]  }
   0x1   :  { %8 = vsyncpa [#allocation6], 0 }
   0x2   :  { %9 = vsyncpa [#allocation4], 0  ;;  %s15_s11 = sshll.u32 %s461_s0, 4  ;;  %s416_s12 = smov [#allocation2]   ;;  %s16_s11 = int_to_ptr.hbm [resolvable:$true] %s15_s11 }
   0x3   :  { %s17_s13 = sshll.u32 %s416_s12, 4  ;;  %s25_s16 = sshll.u32 %s462_s1, 4  ;;  %s18_s13 = int_to_ptr.vmem [resolvable:$true] %s17_s13  ;;  %s26_s16 = int_to_ptr.hbm [resolvable:$true] %s25_s16 }
   0x4   :  { %20 = dma.hbm_to_vmem [thread:$0]  %s16_s11, 512, %s18_s13, [#allocation3]  }
   0x5   :  { %s417_s17 = smov [#allocation5]   ;;  %s418_s19 = smov 128  }
   0x6   :  { %s27_s18 = sshll.u32 %s417_s17, 4  ;;  %s419_s20 = smov 8   ;;  %s28_s18 = int_to_ptr.vmem [resolvable:$true] %s27_s18 }
   0x7   :  { %33 = dma.hbm_to_vmem [thread:$0]  %s26_s16, 10496, %s28_s18, [#allocation6], %s418_s19, %s418_s19, %s419_s20  }
   0x8   :  { %410 = dma.done.wait [#allocation3], 512  }
   0x9   :  { %411 = vsyncadd [#allocation3], 4294966784 }
   0xa   :  { %412 = dma.done.wait [#allocation6], 10496  }
   0xb   :  { %413 = vsyncadd [#allocation6], 4294956800  ;;  %v93_v0 = vld [vmem:[#allocation5 + $0x178] sm:$0xff]  ;;  %v92_v2 = vld [vmem:[#allocation5 + $0x170] sm:$0xff]  ;;  %vm131_vm0 = vcmask 64512   ;;  %s420_s0 = smov [#allocation7]  }
   0xc   :  { %v61_v1 = vld [vmem:[#allocation5 + $0x78] sm:$0xff]  ;;  %175 = vmatpush.msra.mxu2 %v93_v0  ;;  %v60_v3 = vld [vmem:[#allocation5 + $0x70] sm:$0xff]  ;;  %v91_v5 = vld [vmem:[#allocation5 + $0x168] sm:$0xff]  ;;  %s312_s1 = sshll.u32 %s420_s0, 4  ;;  %s314_s23 = sshll.u32 %s463_s2, 4  ;;  %s313_s1 = int_to_ptr.vmem [resolvable:$true] %s312_s1  ;;  %s315_s23 = int_to_ptr.hbm [resolvable:$true] %s314_s23 }
   0xd   :  { %135 = vmatpush.msra.mxu0 %v61_v1  ;;  %v77_v4 = vld [vmem:[#allocation5 + $0xf8] sm:$0xff]  ;;  %v59_v6 = vld [vmem:[#allocation5 + $0x68] sm:$0xff]  ;;  %v76_v7 = vld [vmem:[#allocation5 + $0xf0] sm:$0xff] }
   0xe   :  { %155 = vmatpush.msra.mxu1 %v77_v4  ;;  %176 = vmatpush.msra.mxu2 %v92_v2  ;;  %v75_v8 = vld [vmem:[#allocation5 + $0xe8] sm:$0xff]  ;;  %v90_v9 = vld [vmem:[#allocation5 + $0x160] sm:$0xff]  ;;  %v89_v12 = vld [vmem:[#allocation5 + $0x158] sm:$0xff] }
   0xf   :  { %136 = vmatpush.msra.mxu0 %v60_v3  ;;  %v58_v10 = vld [vmem:[#allocation5 + $0x60] sm:$0xff]  ;;  %v57_v13 = vld [vmem:[#allocation5 + $0x58] sm:$0xff]  ;;  %v88_v15 = vld [vmem:[#allocation5 + $0x150] sm:$0xff] }
  0x10   :  { %156 = vmatpush.msra.mxu1 %v76_v7  ;;  %177 = vmatpush.msra.mxu2 %v91_v5  ;;  %v74_v11 = vld [vmem:[#allocation5 + $0xe0] sm:$0xff]  ;;  %v73_v14 = vld [vmem:[#allocation5 + $0xd8] sm:$0xff]  ;;  %v56_v16 = vld [vmem:[#allocation5 + $0x50] sm:$0xff] }
  0x11   :  { %137 = vmatpush.msra.mxu0 %v59_v6  ;;  %v72_v17 = vld [vmem:[#allocation5 + $0xd0] sm:$0xff]  ;;  %v87_v18 = vld [vmem:[#allocation5 + $0x148] sm:$0xff]  ;;  %v86_v21 = vld [vmem:[#allocation5 + $0x140] sm:$0xff] }
  0x12   :  { %157 = vmatpush.msra.mxu1 %v75_v8  ;;  %178 = vmatpush.msra.mxu2 %v90_v9  ;;  %v55_v19 = vld [vmem:[#allocation5 + $0x48] sm:$0xff]  ;;  %v54_v22 = vld [vmem:[#allocation5 + $0x40] sm:$0xff]  ;;  %v85_v24 = vld [vmem:[#allocation5 + $0x138] sm:$0xff] }
  0x13   :  { %138 = vmatpush.msra.mxu0 %v58_v10  ;;  %v71_v20 = vld [vmem:[#allocation5 + $0xc8] sm:$0xff]  ;;  %v70_v23 = vld [vmem:[#allocation5 + $0xc0] sm:$0xff]  ;;  %v53_v25 = vld [vmem:[#allocation5 + $0x38] sm:$0xff] }
  0x14   :  { %158 = vmatpush.msra.mxu1 %v74_v11  ;;  %179 = vmatpush.msra.mxu2 %v89_v12  ;;  %v69_v26 = vld [vmem:[#allocation5 + $0xb8] sm:$0xff]  ;;  %v84_v27 = vld [vmem:[#allocation5 + $0x130] sm:$0xff]  ;;  %v94_v29 = vld [vmem:[#allocation5 + $0x180] sm:$0xff] }
  0x15   :  { %139 = vmatpush.msra.mxu0 %v57_v13  ;;  %v52_v28 = vld [vmem:[#allocation5 + $0x30] sm:$0xff]  ;;  %v45_v31 = vld [vmem:[#allocation2 + $0x18] sm:$0xff]  ;;  %v83_v32 = vld [vmem:[#allocation5 + $0x128] sm:$0xff]  ;;  %210 = vmatpush.msra.mxu3 %v94_v29 }
  0x16   :  { %159 = vmatpush.msra.mxu1 %v73_v14  ;;  %180 = vmatpush.msra.mxu2 %v88_v15  ;;  %v68_v30 = vld [vmem:[#allocation5 + $0xb0] sm:$0xff]  ;;  %v51_v33 = vld [vmem:[#allocation5 + $0x28] sm:$0xff]  ;;  %v110_v35 = vld [vmem:[#allocation5 + $0x200] sm:$0xff] }
  0x17   :  { %140 = vmatpush.msra.mxu0 %v56_v16  ;;  %v67_v34 = vld [vmem:[#allocation5 + $0xa8] sm:$0xff]  ;;  %v82_v36 = vld [vmem:[#allocation5 + $0x120] sm:$0xff]  ;;  %325 = vmatmul.msk.f32.vlgmr.msra.gmra.mxu3 %vm131_vm0, %v45_v31  ;;  %v109_v39 = vld [vmem:[#allocation5 + $0x1f8] sm:$0xff] }
  0x18   :  { %160 = vmatpush.msra.mxu1 %v72_v17  ;;  %181 = vmatpush.msra.mxu2 %v87_v18  ;;  %v50_v37 = vld [vmem:[#allocation5 + $0x20] sm:$0xff]  ;;  %v81_v40 = vld [vmem:[#allocation5 + $0x118] sm:$0xff]  ;;  %v108_v43 = vld [vmem:[#allocation5 + $0x1f0] sm:$0xff] }
  0x19   :  { %141 = vmatpush.msra.mxu0 %v55_v19  ;;  %v66_v38 = vld [vmem:[#allocation5 + $0xa0] sm:$0xff]  ;;  %v49_v41 = vld [vmem:[#allocation5 + $0x18] sm:$0xff]  ;;  %217 = vmatpush.msrb.mxu3 %v110_v35  ;;  %v80_v44 = vld [vmem:[#allocation5 + $0x110] sm:$0xff]  ;;  %v259_v35 = vlaneseq }
  0x1a   :  { %161 = vmatpush.msra.mxu1 %v71_v20  ;;  %182 = vmatpush.msra.mxu2 %v86_v21  ;;  %v65_v42 = vld [vmem:[#allocation5 + $0x98] sm:$0xff]  ;;  %v48_v45 = vld [vmem:[#allocation5 + $0x10] sm:$0xff]  ;;  %v107_v47 = vld [vmem:[#allocation5 + $0x1e8] sm:$0xff] }
  0x1b   :  { %142 = vmatpush.msra.mxu0 %v54_v22  ;;  %218 = vmatpush.msrb.mxu3 %v109_v39  ;;  %v64_v46 = vld [vmem:[#allocation5 + $0x90] sm:$0xff]  ;;  %v79_v48 = vld [vmem:[#allocation5 + $0x108] sm:$0xff]  ;;  %v106_v51 = vld [vmem:[#allocation5 + $0x1e0] sm:$0xff] }
  0x1c   :  { %162 = vmatpush.msra.mxu1 %v70_v23  ;;  %183 = vmatpush.msra.mxu2 %v85_v24  ;;  %v47_v49 = vld [vmem:[#allocation5 + $0x8] sm:$0xff]  ;;  %v78_v52 = vld [vmem:[#allocation5 + $0x100] sm:$0xff]  ;;  %v44_v54 = vld [vmem:[#allocation2 + $0x10] sm:$0xff] }
  0x1d   :  { %143 = vmatpush.msra.mxu0 %v53_v25  ;;  %219 = vmatpush.msrb.mxu3 %v108_v43  ;;  %v63_v50 = vld [vmem:[#allocation5 + $0x88] sm:$0xff]  ;;  %v46_v53 = vld [vmem:[#allocation5] sm:$0xff]  ;;  %v105_v57 = vld [vmem:[#allocation5 + $0x1d8] sm:$0xff] }
  0x1e   :  { %163 = vmatpush.msra.mxu1 %v69_v26  ;;  %184 = vmatpush.msra.mxu2 %v84_v27  ;;  %v42_v55 = vld [vmem:[#allocation2] sm:$0xff]  ;;  %v43_v58 = vld [vmem:[#allocation2 + $0x8] sm:$0xff]  ;;  %v104_v59 = vld [vmem:[#allocation5 + $0x1d0] sm:$0xff] }
  0x1f   :  { %144 = vmatpush.msra.mxu0 %v52_v28  ;;  %220 = vmatpush.msrb.mxu3 %v107_v47  ;;  %v62_v56 = vld [vmem:[#allocation5 + $0x80] sm:$0xff]  ;;  %v103_v60 = vld [vmem:[#allocation5 + $0x1c8] sm:$0xff]  ;;  %v101_v62 = vld [vmem:[#allocation5 + $0x1b8] sm:$0xff] }
  0x20   :  { %164 = vmatpush.msra.mxu1 %v68_v30  ;;  %185 = vmatpush.msra.mxu2 %v83_v32  ;;  %v102_v61 = vld [vmem:[#allocation5 + $0x1c0] sm:$0xff]  ;;  %v100_v63 = vld [vmem:[#allocation5 + $0x1b0] sm:$0xff]  ;;  %v99_v0 = vld [vmem:[#allocation5 + $0x1a8] sm:$0xff] }
  0x21   :  { %145 = vmatpush.msra.mxu0 %v51_v33  ;;  %221 = vmatpush.msrb.mxu3 %v106_v51  ;;  %v98_v1 = vld [vmem:[#allocation5 + $0x1a0] sm:$0xff]  ;;  %v97_v2 = vld [vmem:[#allocation5 + $0x198] sm:$0xff]  ;;  %v96_v3 = vld [vmem:[#allocation5 + $0x190] sm:$0xff] }
  0x22   :  { %165 = vmatpush.msra.mxu1 %v67_v34  ;;  %186 = vmatpush.msra.mxu2 %v82_v36  ;;  %v95_v4 = vld [vmem:[#allocation5 + $0x188] sm:$0xff]  ;;  %v126_v5 = vld [vmem:[#allocation5 + $0x280] sm:$0xff]  ;;  %v125_v6 = vld [vmem:[#allocation5 + $0x278] sm:$0xff]  ;;  %v260_v36 = vand.u32 127, %v259_v35 }
  0x23   :  { %146 = vmatpush.msra.mxu0 %v50_v37  ;;  %222 = vmatpush.msrb.mxu3 %v105_v57  ;;  %v124_v7 = vld [vmem:[#allocation5 + $0x270] sm:$0xff]  ;;  %v123_v8 = vld [vmem:[#allocation5 + $0x268] sm:$0xff]  ;;  %v122_v9 = vld [vmem:[#allocation5 + $0x260] sm:$0xff] }
  0x24   :  { %166 = vmatpush.msra.mxu1 %v66_v38  ;;  %187 = vmatpush.msra.mxu2 %v81_v40  ;;  %v121_v10 = vld [vmem:[#allocation5 + $0x258] sm:$0xff]  ;;  %v120_v11 = vld [vmem:[#allocation5 + $0x250] sm:$0xff]  ;;  %v119_v12 = vld [vmem:[#allocation5 + $0x248] sm:$0xff]  ;;  %vm264_vm1 = vcmp.ge.s32.totalorder %v260_v36, 10  ;;  %vm265_vm2 = vcmp.lt.s32.totalorder %v260_v36, 20  ;;  %vm262_vm4 = vcmp.lt.s32.totalorder %v260_v36, 10 }
  0x25   :  { %147 = vmatpush.msra.mxu0 %v49_v41  ;;  %223 = vmatpush.msrb.mxu3 %v104_v59  ;;  %v118_v13 = vld [vmem:[#allocation5 + $0x240] sm:$0xff]  ;;  %v331_v14 = vld [vmem:[#allocation5 + $0x288] ss:$0 sm:$0xff]  ;;  %v117_v15 = vld [vmem:[#allocation5 + $0x238] sm:$0xff]  ;;  %vm267_vm6 = vcmp.ge.s32.totalorder %v260_v36, 20  ;;  %vm268_vm7 = vcmp.lt.s32.totalorder %v260_v36, 22 }
  0x26   :  { %167 = vmatpush.msra.mxu1 %v65_v42  ;;  %188 = vmatpush.msra.mxu2 %v80_v44  ;;  %v116_v16 = vld [vmem:[#allocation5 + $0x230] sm:$0xff]  ;;  %v115_v19 = vld [vmem:[#allocation5 + $0x228] sm:$0xff]  ;;  %v114_v22 = vld [vmem:[#allocation5 + $0x220] sm:$0xff] }
  0x27   :  { %148 = vmatpush.msra.mxu0 %v48_v45  ;;  %224 = vmatpush.msrb.mxu3 %v103_v60  ;;  %v113_v28 = vld [vmem:[#allocation5 + $0x218] sm:$0xff]  ;;  %v112_v29 = vld [vmem:[#allocation5 + $0x210] sm:$0xff]  ;;  %v111_v30 = vld [vmem:[#allocation5 + $0x208] sm:$0xff] }
  0x28   :  { %168 = vmatpush.msra.mxu1 %v64_v46  ;;  %189 = vmatpush.msra.mxu2 %v79_v48  ;;  %v332_v31 = vld [vmem:[#allocation5 + $0x289] ss:$0 sm:$0xff]  ;;  %v333_v37 = vld [vmem:[#allocation5 + $0x28a] ss:$0 sm:$0xff]  ;;  %vm442_vm3 = vmand %vm264_vm1, %vm265_vm2 }
  0x29   :  { %149 = vmatpush.msra.mxu0 %v47_v49  ;;  %225 = vmatpush.msrb.mxu3 %v102_v61  ;;  %vm269_vm11 = vmand %vm267_vm6, %vm268_vm7 }
  0x2a   :  { %169 = vmatpush.msra.mxu1 %v63_v50  ;;  %190 = vmatpush.msra.mxu2 %v78_v52 }
  0x2b   :  { %150 = vmatpush.msra.mxu0 %v46_v53  ;;  %191 = vmatmul.f32.vlgmr.msra.gmra.mxu2 %v44_v54 }
  0x2c   :  { %151 = vmatmul.f32.vlgmr.msra.gmra.mxu0 %v42_v55  ;;  %170 = vmatpush.msra.mxu1 %v62_v56 }
  0x2d   :  { %171 = vmatmul.f32.vlgmr.msra.gmra.mxu1 %v43_v58  ;;  %226 = vmatpush.msrb.mxu3 %v101_v62 }
  0x2e   :  { %239 = vmatpush.msrb.mxu0 %v126_v5 }
  0x2f   :  { %227 = vmatpush.msrb.mxu3 %v100_v63 }
  0x30   :  { %240 = vmatpush.msrb.mxu0 %v125_v6 }
  0x31   :  { %228 = vmatpush.msrb.mxu3 %v99_v0 }
  0x32   :  { %241 = vmatpush.msrb.mxu0 %v124_v7 }
  0x33   :  { %229 = vmatpush.msrb.mxu3 %v98_v1 }
  0x34   :  { %242 = vmatpush.msrb.mxu0 %v123_v8 }
  0x35   :  { %230 = vmatpush.msrb.mxu3 %v97_v2 }
  0x36   :  { %243 = vmatpush.msrb.mxu0 %v122_v9 }
  0x37   :  { %231 = vmatpush.msrb.mxu3 %v96_v3 }
  0x38   :  { %244 = vmatpush.msrb.mxu0 %v121_v10 }
  0x39   :  { %232 = vmatpush.msrb.mxu3 %v95_v4 }
  0x3a   :  { %245 = vmatpush.msrb.mxu0 %v120_v11 }
  0x3c   :  { %246 = vmatpush.msrb.mxu0 %v119_v12 }
  0x3e   :  { %247 = vmatpush.msrb.mxu0 %v118_v13 }
  0x40   :  { %248 = vmatpush.msrb.mxu0 %v117_v15 }
  0x42   :  { %249 = vmatpush.msrb.mxu0 %v116_v16 }
  0x44   :  { %250 = vmatpush.msrb.mxu0 %v115_v19 }
  0x46   :  { %251 = vmatpush.msrb.mxu0 %v114_v22 }
  0x48   :  { %252 = vmatpush.msrb.mxu0 %v113_v28 }
  0x4a   :  { %253 = vmatpush.msrb.mxu0 %v112_v29 }
  0x4c   :  { %254 = vmatpush.msrb.mxu0 %v111_v30 }
  0x9a   :  { %v212_v24 = vpop.f32.mrf.mxu3 }
  0xa9   :  { %v152_v17 = vpop.f32.mrf.mxu0 }
  0xaa   :  { %v153_v18 = vadd.f32 %v331_v14, %v152_v17  ;;  %v172_v20 = vpop.f32.mrf.mxu1 }
  0xac   :  { %v173_v21 = vadd.f32 %v172_v20, %v153_v18 }
  0xae   :  { %v192_v23 = vpop.f32.mrf.mxu2 }
  0xaf   :  { %v193_v25 = vadd.f32 %v192_v23, %v173_v21 }
  0xb1   :  { %v213_v26 = vadd.f32 %v212_v24, %v193_v25 }
  0xb3   :  { %v215_v27 = vmax.f32 %v213_v26, 0.0 }
  0xb5   :  { %233 = vmatmul.f32.vlgmr.msrb.gmra.mxu3 %v215_v27 }
 0x138   :  { %v234_v32 = vpop.f32.mrf.mxu3 }
 0x139   :  { %v235_v33 = vadd.f32 %v332_v31, %v234_v32 }
 0x13b   :  { %v237_v34 = vmax.f32 %v235_v33, 0.0 }
 0x13d   :  { %255 = vmatmul.f32.vlgmr.msrb.gmra.mxu0 %v237_v34 }
 0x1ba   :  { %v256_v38 = vpop.f32.mrf.mxu0 }
 0x1bb   :  { %v257_v40 = vadd.f32 %v333_v37, %v256_v38 }
 0x1bd   :  { %v273_v41 = vsel %vm442_vm3, %v257_v40, -1e+30  ;;  %v270_v42 = vsel %vm262_vm4, %v257_v40, -1e+30  ;;  %v304_v3 = vsel %vm269_vm11, %v257_v40, 0.0 }
 0x1be   :  { %274 = vmax.xlane.f32.xlu0 %v273_v41 }
 0x1c6   :  { %271 = vmax.xlane.f32.xlu0 %v270_v42 }
 0x231   :  { %v275_v43 = vpop.xlane.xlu0 %274 }
 0x232   :  { %v276_v44 = vsel %vm442_vm3, %v275_v43, 1e+30 }
 0x239   :  { %v272_v45 = vpop.xlane.xlu0 %271 }
 0x23a   :  { %v277_v46 = vsel %vm262_vm4, %v272_v45, %v276_v44 }
 0x23b   :  { %v278_v47 = vsub.f32 %v257_v40, %v277_v46 }
 0x23d   :  { %v279_v48 = vmul.f32 1.442695, %v278_v47 }
 0x23f   :  { %334 = vpow2.f32 %v279_v48 }
 0x245   :  { %v335_v49 = vpop.eup %334 }
 0x246   :  { %v284_v50 = vsel %vm442_vm3, %v335_v49, 0.0  ;;  %v281_v51 = vsel %vm262_vm4, %v335_v49, 0.0 }
 0x247   :  { %285 = vadd.xlane.f32.xlu1 %v284_v50 }
 0x24f   :  { %282 = vadd.xlane.f32.xlu1 %v281_v51 }
 0x2ba   :  { %v286_v52 = vpop.xlane.xlu1 %285 }
 0x2bb   :  { %v287_v53 = vsel %vm442_vm3, %v286_v52, 1.0 }
 0x2c2   :  { %v283_v54 = vpop.xlane.xlu1 %282 }
 0x2c3   :  { %v288_v55 = vsel %vm262_vm4, %v283_v54, %v287_v53 }
 0x2c4   :  { %336 = vrcp.f32 %v288_v55  ;;  %v300_v59 = vand.u32 2147483648, %v288_v55  ;;  %v298_v61 = vand.u32 2147483647, %v288_v55  ;;  %vm294_vm8 = vweird.f32 %v288_v55 }
 0x2c6   :  { %v301_v63 = vor.u32 1.1754944e-38, %v300_v59  ;;  %vm299_vm10 = vcmp.eq.f32.partialorder %v298_v61, 8.507059e+37 }
 0x2ca   :  { %v337_v56 = vpop.eup %336 }
 0x2cb   :  { %v290_v57 = vmul.f32 %v337_v56, %v288_v55  ;;  %vm295_vm5 = vweird.f32 %v337_v56 }
 0x2cc   :  { %vm296_vm9 = vmor %vm294_vm8, %vm295_vm5 }
 0x2cd   :  { %v291_v58 = vsub.f32 1.0, %v290_v57 }
 0x2cf   :  { %v292_v60 = vmul.f32 %v337_v56, %v291_v58 }
 0x2d1   :  { %v293_v62 = vadd.f32 %v337_v56, %v292_v60 }
 0x2d3   :  { %v297_v0 = vsel %vm296_vm9, %v337_v56, %v293_v62 }
 0x2d4   :  { %v302_v1 = vsel %vm299_vm10, %v301_v63, %v297_v0 }
 0x2d5   :  { %v303_v2 = vmul.f32 %v335_v49, %v302_v1 }
 0x2d7   :  { %v305_v4 = vadd.f32 %v304_v3, %v303_v2 }
 0x2d9   :  { %306 = vst [vmem:[#allocation7] sm:$0xff] %v305_v4 }
 0x2da   :  { %317 = dma.vmem_to_hbm [thread:$0]  %s313_s1, 128, %s315_s23, [#allocation4]  }
 0x2db   :  { %414 = dma.done.wait [#allocation4], 128  }
 0x2dc   :  { %415 = vsyncadd [#allocation4], 4294967168 }
 0x2dd   :  { %322 = vsyncpa [#allocation3], 1 }
 0x2de   :  { %323 = vsyncpa [#allocation6], 1 }
 0x2df   :  { %324 = vsyncpa [#allocation4], 1 }

</bundles_post_ra>
